<compile_context>
chip_gen: v7x
topology: tpu7x:2x2x1
jax: 0.10.0
libtpu: 0.0.40
codegen_flags: <defaults>
</compile_context>

<pallas_src>
import math

import jax
import jax.numpy as jnp
from jax import lax
from jax.experimental import pallas as pl
from jax.experimental.pallas import tpu as pltpu

# ---------------------------------------------------------------------------
# Hyper-parameters (small but consistent with the module's constructor).
# ---------------------------------------------------------------------------
INPUT_DIM = 96           # divisible by 6 -> MultiheadAttention uses 6 heads
HIDDEN_DIM = 128
PROJECTION_DIM = 64
NUM_HEADS = 6
TEMPERATURE = 0.1
BN_EPS = 1e-5
BATCH = 8
LANES = 128              # lane-padded width used everywhere inside the kernel

MASK_TYPE_MAP = {'none': 0, 'atom_mask': 1, 'bond_deletion': 2,
                 'subgraph_removal': 3}

# Row offsets of each folded parameter inside the single packed slab.
_W1F_ROW = 0      # [128,128] W1 (BN1 folded); rows >= 96 zero-padded
_W1A_ROW = 128    # [128,128] (Wv@Wo)@W1f  (aug branch); rows >= 96 zero
_W2F_ROW = 256    # [128,128] W2 (BN2 folded); cols >= 64 zero-padded
_B1F_ROW = 384    # row 384:  b1f
_B1A_ROW = 392    # row 392:  b1a = (bv@Wo+bo)@W1f + b1f
_B2F_ROW = 400    # row 400:  b2f (cols >= 64 zero)
_SLAB_ROWS = 408


# ---------------------------------------------------------------------------
# Single fused kernel:
#   layer-1 (orig / folded-MHA aug branches) -> ReLU -> layer-2 (+BN2 fold)
#   -> L2 normalize -> InfoNCE loss + top-1 accuracy -> one SMEM scalar pair.
# ---------------------------------------------------------------------------
def _fused_kernel(x_ref, w_ref, out_ref, h_scr):
    b = x_ref.shape[0] // 2
    n = 2 * b
    inv_tau = 1.0 / TEMPERATURE
    neg = jnp.float32(-1e30)

    # Static, zero-cost views into the packed parameter slab.
    w1f = w_ref[_W1F_ROW:_W1F_ROW + LANES, :]
    w1a = w_ref[_W1A_ROW:_W1A_ROW + LANES, :]
    w2f = w_ref[_W2F_ROW:_W2F_ROW + LANES, :]
    b1f = w_ref[_B1F_ROW:_B1F_ROW + 1, :]
    b1a = w_ref[_B1A_ROW:_B1A_ROW + 1, :]
    b2f = w_ref[_B2F_ROW:_B2F_ROW + 1, :]

    # Layer 1: two independent MXU passes (orig uses W1f; aug uses the deeper
    # fold W1a = Wv@Wo@W1f of the seq-len-1 attention), written into the two
    # sublane halves of one [2B, 128] VMEM buffer.  ReLU; Dropout = id (eval).
    h_scr[0:b, :] = jnp.maximum(
        jnp.dot(x_ref[0:b, :], w1f, preferred_element_type=jnp.float32) + b1f, 0.0)
    h_scr[b:n, :] = jnp.maximum(
        jnp.dot(x_ref[b:n, :], w1a, preferred_element_type=jnp.float32) + b1a, 0.0)

    # Layer 2 (+ folded BN2).  Cols >= PROJECTION_DIM of w2f/b2f are zero, so
    # p[:, 64:] == 0 and contributes nothing downstream.
    p = jnp.dot(h_scr[...], w2f, preferred_element_type=jnp.float32) + b2f  # [2B,128]

    # F.normalize(p, 2, dim=1) via rsqrt (EUP) instead of sqrt + divide (VALU).
    ss = jnp.sum(p * p, axis=1, keepdims=True)
    z = p * lax.rsqrt(ss + 1e-24)                                           # [2B,128]

    # ---- InfoNCE over the 2B x 2B similarity matrix (z == [zi ; zj]) ----
    sim = lax.dot_general(z, z, (((1,), (1,)), ((), ())),
                          preferred_element_type=jnp.float32) * inv_tau     # [2B,2B]
    row = lax.broadcasted_iota(jnp.int32, (n, n), 0)
    col = lax.broadcasted_iota(jnp.int32, (n, n), 1)
    pos = (col == row + b) | (col == row - b)
    pos_sim = jnp.sum(jnp.where(pos, sim, 0.0), axis=1, keepdims=True)      # [2B,1]
    masked = jnp.where(row == col, neg, sim)               # drop self-similarity
    row_max = jnp.max(masked, axis=1, keepdims=True)
    lse = row_max + jnp.log(jnp.sum(jnp.exp(masked - row_max),
                                    axis=1, keepdims=True))
    out_ref[0] = jnp.sum(lse - pos_sim) * (1.0 / n)

    # ---- accuracy: reuse sim[:B, B:] (== zi @ zj.T / tau) via masking ----
    # Row i (< B) is correct iff its positive similarity (pos_sim, already
    # computed) attains the row max over the augmented columns.
    rmax_aug = jnp.max(jnp.where(col >= b, sim, neg), axis=1, keepdims=True)
    rows1 = lax.broadcasted_iota(jnp.int32, (n, 1), 0)
    correct = jnp.where((rows1 < b) & (pos_sim >= rmax_aug), 1.0, 0.0)
    out_ref[1] = jnp.sum(correct) * (1.0 / b)


# ---------------------------------------------------------------------------
# One-time offline parameter folding + packing (host-side, outside kernel).
# ---------------------------------------------------------------------------
def fold_params(p):
    """Fold eval-mode BatchNorm into the projection Linears, fold the
    seq-len-1 MultiheadAttention (Wv@Wo affine) through the first Linear,
    and pack everything into one lane-padded f32 slab (single DMA)."""
    s1 = p['bn1_gamma'] / jnp.sqrt(p['bn1_var'] + BN_EPS)
    t1 = p['bn1_beta'] - p['bn1_mean'] * s1
    s2 = p['bn2_gamma'] / jnp.sqrt(p['bn2_var'] + BN_EPS)
    t2 = p['bn2_beta'] - p['bn2_mean'] * s2

    w1f = p['w1'] * s1                        # [D, H]
    b1f = p['b1'] * s1 + t1                   # [1, H]
    w2f = p['w2'] * s2                        # [H, P]
    b2f = p['b2'] * s2 + t2                   # [1, P]

    wvo = jnp.dot(p['wv'], p['wo'])           # [D, D]   seq-len-1 MHA affine
    bvo = jnp.dot(p['bv'], p['wo']) + p['bo']  # [1, D]
    w1a = jnp.dot(wvo, w1f)                   # [D, H]   folded aug branch
    b1a = jnp.dot(bvo, w1f) + b1f             # [1, H]

    def pad(a, rows):
        return jnp.pad(a, ((0, rows - a.shape[0]), (0, LANES - a.shape[1])))

    slab = jnp.concatenate([
        pad(w1f, LANES),        # rows   0..127
        pad(w1a, LANES),        # rows 128..255
        pad(w2f, LANES),        # rows 256..383
        pad(b1f, 8),            # row  384
        pad(b1a, 8),            # row  392
        pad(b2f, 8),            # row  400
    ], axis=0).astype(jnp.float32)            # [408, 128]
    assert slab.shape == (_SLAB_ROWS, LANES)
    return slab


# ---------------------------------------------------------------------------
# Host-side glue: augmented_data parsing (mirrors the module's mask_info
# construction).  Its result only ever fed the attention *query*, which is
# algebraically dead for seq_len == 1, so it does not affect the output.
# TODO(synk): augmented_data / pretrain_infos dict parsing stays host-side
# Python (no Pallas equivalent); it feeds only the dead query branch.
# ---------------------------------------------------------------------------
def _extract_mask_type_ids(augmented_data, batch_size):
    ids = []
    for i in range(batch_size):
        sample_aug_data = []
        if i < len(augmented_data):
            sample_aug_data = (augmented_data[i]
                               if isinstance(augmented_data[i], list)
                               else [augmented_data[i]])
        if sample_aug_data:
            t = sample_aug_data[0].get('augment_type', 'none')
        else:
            t = 'none'
        ids.append(MASK_TYPE_MAP.get(t, 0))
    return jnp.asarray(ids, dtype=jnp.int32)


def molecule_recovery_forward(param_slab, original_embeddings,
                              augmented_embeddings, augmented_data,
                              pretrain_infos):
    """Mirrors MoleculeRecoveryHead.forward -> (loss, accuracy)."""
    b = original_embeddings.shape[0]
    # Kept for spec fidelity; dead w.r.t. (loss, accuracy) — see header comment.
    _ = _extract_mask_type_ids(augmented_data, b)

    # Stack [orig ; aug] and lane-pad to 128 -> a single input DMA.
    x = jnp.concatenate([original_embeddings, augmented_embeddings], axis=0)
    x = jnp.pad(x, ((0, 0), (0, LANES - x.shape[1]))).astype(jnp.float32)

    out = pl.pallas_call(
        _fused_kernel,
        out_shape=jax.ShapeDtypeStruct((2,), jnp.float32),
        in_specs=[pl.BlockSpec(memory_space=pltpu.MemorySpace.VMEM),
                  pl.BlockSpec(memory_space=pltpu.MemorySpace.VMEM)],
        out_specs=pl.BlockSpec(memory_space=pltpu.MemorySpace.SMEM),
        scratch_shapes=[pltpu.VMEM((2 * b, LANES), jnp.float32)],
        cost_estimate=pl.CostEstimate(flops=1_200_000, transcendentals=300,
                                      bytes_accessed=217_112),
    )(x, param_slab)
    return out[0], out[1]


# ---------------------------------------------------------------------------
# Deterministic synthetic parameter initialization (weights stored [in, out]).
# The query-branch params (mask embedding, mask_fusion, Wq/Wk) exist but never
# enter the kernel (dead code for seq_len == 1 attention).
# ---------------------------------------------------------------------------
def init_params(key):
    ks = jax.random.split(key, 10)

    def kaiming(k, shape):                 # kaiming_normal_, mode='fan_out'
        fan_out = shape[1]
        return jax.random.normal(k, shape, jnp.float32) * math.sqrt(2.0 / fan_out)

    p = {}
    # projection_head: Linear(D,H) + BN(H) + ReLU + Dropout + Linear(H,P) + BN(P)
    p['w1'] = kaiming(ks[0], (INPUT_DIM, HIDDEN_DIM))
    p['b1'] = jnp.zeros((1, HIDDEN_DIM), jnp.float32)
    p['bn1_gamma'] = jnp.ones((1, HIDDEN_DIM), jnp.float32)
    p['bn1_beta'] = jnp.zeros((1, HIDDEN_DIM), jnp.float32)
    p['bn1_mean'] = jnp.zeros((1, HIDDEN_DIM), jnp.float32)
    p['bn1_var'] = jnp.ones((1, HIDDEN_DIM), jnp.float32)
    p['w2'] = kaiming(ks[1], (HIDDEN_DIM, PROJECTION_DIM))
    p['b2'] = jnp.zeros((1, PROJECTION_DIM), jnp.float32)
    p['bn2_gamma'] = jnp.ones((1, PROJECTION_DIM), jnp.float32)
    p['bn2_beta'] = jnp.zeros((1, PROJECTION_DIM), jnp.float32)
    p['bn2_mean'] = jnp.zeros((1, PROJECTION_DIM), jnp.float32)
    p['bn2_var'] = jnp.ones((1, PROJECTION_DIM), jnp.float32)

    # mask_type_embedding: Embedding(4, D), N(0, 0.1)   (dead: query branch)
    p['mask_emb'] = jax.random.normal(ks[2], (4, INPUT_DIM), jnp.float32) * 0.1

    # mask_fusion: Linear(2D,D)+ReLU+Dropout+Linear(D,D) (dead: query branch)
    p['wf1a'] = kaiming(ks[3], (INPUT_DIM, INPUT_DIM))
    p['wf1b'] = kaiming(ks[4], (INPUT_DIM, INPUT_DIM))
    p['bf1'] = jnp.zeros((1, INPUT_DIM), jnp.float32)
    p['wf2'] = kaiming(ks[5], (INPUT_DIM, INPUT_DIM))
    p['bf2'] = jnp.zeros((1, INPUT_DIM), jnp.float32)

    # MultiheadAttention projections (only Wv / Wo / bv / bo are live)
    s = 1.0 / math.sqrt(INPUT_DIM)
    p['wq'] = jax.random.normal(ks[6], (INPUT_DIM, INPUT_DIM), jnp.float32) * s
    p['wk'] = jax.random.normal(ks[7], (INPUT_DIM, INPUT_DIM), jnp.float32) * s
    p['wv'] = jax.random.normal(ks[8], (INPUT_DIM, INPUT_DIM), jnp.float32) * s
    p['wo'] = kaiming(ks[9], (INPUT_DIM, INPUT_DIM))
    p['bq'] = jnp.zeros((1, INPUT_DIM), jnp.float32)
    p['bk'] = jnp.zeros((1, INPUT_DIM), jnp.float32)
    p['bv'] = jnp.zeros((1, INPUT_DIM), jnp.float32)
    p['bo'] = jnp.zeros((1, INPUT_DIM), jnp.float32)
    return p


if __name__ == "__main__":
    key = jax.random.PRNGKey(0)
    k_params, k_orig, k_aug = jax.random.split(key, 3)

    params = init_params(k_params)
    param_slab = fold_params(params)        # one-time offline fold + pack
    original_embeddings = jax.random.normal(k_orig, (BATCH, INPUT_DIM), jnp.float32)
    augmented_embeddings = jax.random.normal(k_aug, (BATCH, INPUT_DIM), jnp.float32)

    augmented_data = [
        {'augment_type': 'atom_mask', 'masked_indices': [0, 2]},
        [{'augment_type': 'bond_deletion', 'masked_indices': [1]}],
        {'augment_type': 'subgraph_removal', 'masked_indices': [0, 1, 2]},
        {'augment_type': 'none', 'masked_indices': []},
        [{'augment_type': 'atom_mask', 'masked_indices': [3]}],
        {'augment_type': 'bond_deletion', 'masked_indices': [2, 4]},
        {'augment_type': 'unknown_kind', 'masked_indices': []},   # falls back to 0
        # batch element 7 intentionally missing -> 'none'
    ]
    pretrain_infos = [{} for _ in range(BATCH)]

    loss, acc = molecule_recovery_forward(param_slab, original_embeddings,
                                          augmented_embeddings,
                                          augmented_data, pretrain_infos)
    jax.block_until_ready(loss)
    jax.block_until_ready(acc)
    print("KERNEL_OK")
</pallas_src>

<mosaic_0001>
module attributes {stable_mosaic.version = 11 : i64} {
  func.func @_fused_kernel(%arg0: memref<16x128xf32, #tpu.memory_space<vmem>>, %arg1: memref<408x128xf32, #tpu.memory_space<vmem>>, %arg2: memref<2xf32, #tpu.memory_space<smem>>, %arg3: memref<16x128xf32, #tpu.memory_space<vmem>>) attributes {dimension_semantics = [], scalar_prefetch = 0 : i64, scratch_operands = 1 : i64, tpu.core_type = #tpu.core_type<tc>} {
    %c0 = arith.constant 0 : index
    %c0_0 = arith.constant 0 : index
    %0 = vector.load %arg1[%c0, %c0_0] : memref<408x128xf32, #tpu.memory_space<vmem>>, vector<128x128xf32>
    %c128 = arith.constant 128 : index
    %c0_1 = arith.constant 0 : index
    %1 = vector.load %arg1[%c128, %c0_1] : memref<408x128xf32, #tpu.memory_space<vmem>>, vector<128x128xf32>
    %c256 = arith.constant 256 : index
    %c0_2 = arith.constant 0 : index
    %2 = vector.load %arg1[%c256, %c0_2] : memref<408x128xf32, #tpu.memory_space<vmem>>, vector<128x128xf32>
    %c384 = arith.constant 384 : index
    %c0_3 = arith.constant 0 : index
    %3 = vector.load %arg1[%c384, %c0_3] : memref<408x128xf32, #tpu.memory_space<vmem>>, vector<1x128xf32>
    %c392 = arith.constant 392 : index
    %c0_4 = arith.constant 0 : index
    %4 = vector.load %arg1[%c392, %c0_4] : memref<408x128xf32, #tpu.memory_space<vmem>>, vector<1x128xf32>
    %c400 = arith.constant 400 : index
    %c0_5 = arith.constant 0 : index
    %5 = vector.load %arg1[%c400, %c0_5] : memref<408x128xf32, #tpu.memory_space<vmem>>, vector<1x128xf32>
    %c0_6 = arith.constant 0 : index
    %c0_7 = arith.constant 0 : index
    %6 = vector.load %arg0[%c0_6, %c0_7] : memref<16x128xf32, #tpu.memory_space<vmem>>, vector<8x128xf32>
    %cst = arith.constant dense<0.000000e+00> : vector<8x128xf32>
    %7 = tpu.matmul %6, %0, %cst {dimension_numbers = #tpu.dot_dimension_numbers<[1], [0], [0], [1], [0, 0, 1, 1], [], []>} : vector<8x128xf32>, vector<128x128xf32>, vector<8x128xf32> -> vector<8x128xf32>
    %8 = vector.broadcast %3 : vector<1x128xf32> to vector<8x128xf32>
    %9 = arith.addf %7, %8 : vector<8x128xf32>
    %cst_8 = arith.constant 0.000000e+00 : f32
    %10 = vector.broadcast %cst_8 : f32 to vector<8x128xf32>
    %11 = arith.maximumf %9, %10 : vector<8x128xf32>
    %c0_9 = arith.constant 0 : index
    %c0_10 = arith.constant 0 : index
    %12 = vector.load %arg3[%c0_9, %c0_10] : memref<16x128xf32, #tpu.memory_space<vmem>>, vector<8x128xf32>
    tpu.vector_store %arg3[%c0_9, %c0_10], %11 {strides = array<i32>} : memref<16x128xf32, #tpu.memory_space<vmem>>, vector<8x128xf32>,
    %c8 = arith.constant 8 : index
    %c0_11 = arith.constant 0 : index
    %13 = vector.load %arg0[%c8, %c0_11] : memref<16x128xf32, #tpu.memory_space<vmem>>, vector<8x128xf32>
    %cst_12 = arith.constant dense<0.000000e+00> : vector<8x128xf32>
    %14 = tpu.matmul %13, %1, %cst_12 {dimension_numbers = #tpu.dot_dimension_numbers<[1], [0], [0], [1], [0, 0, 1, 1], [], []>} : vector<8x128xf32>, vector<128x128xf32>, vector<8x128xf32> -> vector<8x128xf32>
    %15 = vector.broadcast %4 : vector<1x128xf32> to vector<8x128xf32>
    %16 = arith.addf %14, %15 : vector<8x128xf32>
    %cst_13 = arith.constant 0.000000e+00 : f32
    %17 = vector.broadcast %cst_13 : f32 to vector<8x128xf32>
    %18 = arith.maximumf %16, %17 : vector<8x128xf32>
    %c8_14 = arith.constant 8 : index
    %c0_15 = arith.constant 0 : index
    %19 = vector.load %arg3[%c8_14, %c0_15] : memref<16x128xf32, #tpu.memory_space<vmem>>, vector<8x128xf32>
    tpu.vector_store %arg3[%c8_14, %c0_15], %18 {strides = array<i32>} : memref<16x128xf32, #tpu.memory_space<vmem>>, vector<8x128xf32>,
    %c0_16 = arith.constant 0 : index
    %c0_17 = arith.constant 0 : index
    %20 = vector.load %arg3[%c0_16, %c0_17] : memref<16x128xf32, #tpu.memory_space<vmem>>, vector<16x128xf32>
    %cst_18 = arith.constant dense<0.000000e+00> : vector<16x128xf32>
    %21 = tpu.matmul %20, %2, %cst_18 {dimension_numbers = #tpu.dot_dimension_numbers<[1], [0], [0], [1], [0, 0, 1, 1], [], []>} : vector<16x128xf32>, vector<128x128xf32>, vector<16x128xf32> -> vector<16x128xf32>
    %22 = vector.broadcast %5 : vector<1x128xf32> to vector<16x128xf32>
    %23 = arith.addf %21, %22 : vector<16x128xf32>
    %24 = arith.mulf %23, %23 : vector<16x128xf32>
    %cst_19 = arith.constant dense<0.000000e+00> : vector<16xf32>
    %25 = vector.multi_reduction <add>, %24, %cst_19 [1] : vector<16x128xf32> to vector<16xf32>
    %26 = vector.shape_cast %25 : vector<16xf32> to vector<16x1xf32>
    %cst_20 = arith.constant 1.000000e-24 : f32
    %27 = vector.broadcast %cst_20 : f32 to vector<16x1xf32>
    %28 = arith.addf %26, %27 : vector<16x1xf32>
    %29 = math.rsqrt %28 : vector<16x1xf32>
    %30 = vector.broadcast %29 : vector<16x1xf32> to vector<16x128xf32>
    %31 = arith.mulf %23, %30 : vector<16x128xf32>
    %cst_21 = arith.constant dense<0.000000e+00> : vector<16x16xf32>
    %32 = tpu.matmul %31, %31, %cst_21 {dimension_numbers = #tpu.dot_dimension_numbers<[1], [1], [0], [0], [0, 0, 1, 0], [], []>} : vector<16x128xf32>, vector<16x128xf32>, vector<16x16xf32> -> vector<16x16xf32>
    %cst_22 = arith.constant 1.000000e+01 : f32
    %33 = vector.broadcast %cst_22 : f32 to vector<16x16xf32>
    %34 = arith.mulf %32, %33 : vector<16x16xf32>
    %35 = tpu.iota {dimensions = array<i32: 0>} : vector<16x16xi32>
    %36 = tpu.iota {dimensions = array<i32: 1>} : vector<16x16xi32>
    %c8_i32 = arith.constant 8 : i32
    %37 = vector.broadcast %c8_i32 : i32 to vector<16x16xi32>
    %38 = arith.addi %35, %37 : vector<16x16xi32>
    %39 = arith.cmpi eq, %36, %38 : vector<16x16xi32>
    %c8_i32_23 = arith.constant 8 : i32
    %40 = vector.broadcast %c8_i32_23 : i32 to vector<16x16xi32>
    %41 = arith.subi %35, %40 : vector<16x16xi32>
    %42 = arith.cmpi eq, %36, %41 : vector<16x16xi32>
    %43 = arith.ori %39, %42 : vector<16x16xi1>
    %cst_24 = arith.constant 0.000000e+00 : f32
    %44 = vector.broadcast %cst_24 : f32 to vector<16x16xf32>
    %45 = arith.select %43, %34, %44 : vector<16x16xi1>, vector<16x16xf32>
    %cst_25 = arith.constant dense<0.000000e+00> : vector<16xf32>
    %46 = vector.multi_reduction <add>, %45, %cst_25 [1] : vector<16x16xf32> to vector<16xf32>
    %47 = vector.shape_cast %46 : vector<16xf32> to vector<16x1xf32>
    %48 = arith.cmpi eq, %35, %36 : vector<16x16xi32>
    %cst_26 = arith.constant -1.000000e+30 : f32
    %49 = vector.broadcast %cst_26 : f32 to vector<16x16xf32>
    %50 = arith.select %48, %49, %34 : vector<16x16xi1>, vector<16x16xf32>
    %cst_27 = arith.constant dense<0xFF800000> : vector<16xf32>
    %51 = vector.multi_reduction <maximumf>, %50, %cst_27 [1] : vector<16x16xf32> to vector<16xf32>
    %52 = vector.shape_cast %51 : vector<16xf32> to vector<16x1xf32>
    %53 = vector.broadcast %52 : vector<16x1xf32> to vector<16x16xf32>
    %54 = arith.subf %50, %53 : vector<16x16xf32>
    %55 = math.exp %54 : vector<16x16xf32>
    %cst_28 = arith.constant dense<0.000000e+00> : vector<16xf32>
    %56 = vector.multi_reduction <add>, %55, %cst_28 [1] : vector<16x16xf32> to vector<16xf32>
    %57 = vector.shape_cast %56 : vector<16xf32> to vector<16x1xf32>
    %58 = math.log %57 : vector<16x1xf32>
    %59 = arith.addf %52, %58 : vector<16x1xf32>
    %60 = arith.subf %59, %47 : vector<16x1xf32>
    %61 = vector.shape_cast %60 : vector<16x1xf32> to vector<1x16x1xf32>
    %cst_29 = arith.constant dense<0.000000e+00> : vector<1xf32>
    %62 = vector.multi_reduction <add>, %61, %cst_29 [1, 2] : vector<1x16x1xf32> to vector<1xf32>
    %63 = vector.shape_cast %62 : vector<1xf32> to vector<1x1x1xf32>
    %64 = vector.extract %63[0, 0, 0] : f32 from vector<1x1x1xf32>
    %cst_30 = arith.constant 6.250000e-02 : f32
    %65 = arith.mulf %64, %cst_30 : f32
    %c0_31 = arith.constant 0 : index
    %66 = memref.load %arg2[%c0_31] : memref<2xf32, #tpu.memory_space<smem>>
    memref.store %65, %arg2[%c0_31] : memref<2xf32, #tpu.memory_space<smem>>
    %c8_i32_32 = arith.constant 8 : i32
    %67 = vector.broadcast %c8_i32_32 : i32 to vector<16x16xi32>
    %68 = arith.cmpi sge, %36, %67 : vector<16x16xi32>
    %cst_33 = arith.constant -1.000000e+30 : f32
    %69 = vector.broadcast %cst_33 : f32 to vector<16x16xf32>
    %70 = arith.select %68, %34, %69 : vector<16x16xi1>, vector<16x16xf32>
    %cst_34 = arith.constant dense<0xFF800000> : vector<16xf32>
    %71 = vector.multi_reduction <maximumf>, %70, %cst_34 [1] : vector<16x16xf32> to vector<16xf32>
    %72 = vector.shape_cast %71 : vector<16xf32> to vector<16x1xf32>
    %73 = tpu.iota {dimensions = array<i32: 0>} : vector<16x1xi32>
    %c8_i32_35 = arith.constant 8 : i32
    %74 = vector.broadcast %c8_i32_35 : i32 to vector<16x1xi32>
    %75 = arith.cmpi slt, %73, %74 : vector<16x1xi32>
    %76 = arith.cmpf oge, %47, %72 : vector<16x1xf32>
    %77 = arith.andi %75, %76 : vector<16x1xi1>
    %cst_36 = arith.constant 1.000000e+00 : f32
    %cst_37 = arith.constant 0.000000e+00 : f32
    %78 = vector.broadcast %cst_36 : f32 to vector<16x1xf32>
    %79 = vector.broadcast %cst_37 : f32 to vector<16x1xf32>
    %80 = arith.select %77, %78, %79 : vector<16x1xi1>, vector<16x1xf32>
    %81 = vector.shape_cast %80 : vector<16x1xf32> to vector<1x16x1xf32>
    %cst_38 = arith.constant dense<0.000000e+00> : vector<1xf32>
    %82 = vector.multi_reduction <add>, %81, %cst_38 [1, 2] : vector<1x16x1xf32> to vector<1xf32>
    %83 = vector.shape_cast %82 : vector<1xf32> to vector<1x1x1xf32>
    %84 = vector.extract %83[0, 0, 0] : f32 from vector<1x1x1xf32>
    %cst_39 = arith.constant 1.250000e-01 : f32
    %85 = arith.mulf %84, %cst_39 : f32
    %c1 = arith.constant 1 : index
    %86 = memref.load %arg2[%c1] : memref<2xf32, #tpu.memory_space<smem>>
    memref.store %85, %arg2[%c1] : memref<2xf32, #tpu.memory_space<smem>>
    return
  }
}

</mosaic_0001>

<bundles_post_ra>
// kernel: tpu_custom_call.1
= control target key start
LH: loop header
LB: loop body
LE: loop exit
PB: predicated region body
PF: predicated region fallthrough
CT: control target
= control target key end

     0   :  { %7 = vsyncpa [#allocation4], 0  ;;  %s961_s0 = inlined_call_operand.hbm [shape: f32[16,128], index: 0, kind: input, shape index: {}]   ;;  %s962_s1 = inlined_call_operand.hbm [shape: f32[408,128], index: 1, kind: input, shape index: {}]   ;;  %s963_s2 = inlined_call_operand.hbm [shape: f32[2], index: 2, kind: output, shape index: {}]  }
   0x1   :  { %8 = vsyncpa [#allocation7], 0 }
   0x2   :  { %9 = vsyncpa [#allocation5], 0  ;;  %s870_s9 = smov [#allocation3]   ;;  %s810_s13 = scalar_lea.hbm %s961_s0, 256 }
   0x3   :  { %s15_s10 = sshll.u32 %s870_s9, 4  ;;  %p811_p0 = scmp.ne.s32.totalorder %s961_s0, %s810_s13  ;;  %s16_s10 = int_to_ptr.vmem [resolvable:$true] %s15_s10 }
   0x4   :  { %p814_p1 = scmp.lt.u32.totalorder %s810_s13, %s961_s0 }
   0x6   :  { %p816_p2 = pnand %p814_p1, %p811_p0 }
   0x8   :  { %819 = shalt.err (!%p816_p2)
}
   0x9   :  { %s820_s18 = scalar_lea.vmem %s16_s10, 256  ;;  %p825_p4 = scmp.lt.s32.totalorder %s16_s10, %s16_s10 }
   0xa   :  { %p821_p3 = scmp.ne.s32.totalorder %s16_s10, %s820_s18  ;;  %p826_p5 = scmp.lt.s32.totalorder %s820_s18, %s820_s18 }
   0xc   :  { %p827_p6 = por %p826_p5, %p825_p4 }
   0xe   :  { %p828_p7 = pnand %p827_p6, %p821_p3 }
  0x10   :  { %831 = shalt.err (!%p828_p7)
}
  0x11   :  { %s871_s19 = smov 128   ;;  %s872_s20 = smov 8  }
  0x12   :  { %21 = dma.hbm_to_vmem [thread:$0]  %s961_s0, 256, %s16_s10, [#allocation4], %s871_s19, %s871_s19, %s872_s20  }
  0x13   :  { %s873_s23 = smov [#allocation6]   ;;  %s832_s27 = scalar_lea.hbm %s962_s1, 6528 }
  0x14   :  { %s27_s24 = sshll.u32 %s873_s23, 4  ;;  %p833_p8 = scmp.ne.s32.totalorder %s962_s1, %s832_s27  ;;  %s28_s24 = int_to_ptr.vmem [resolvable:$true] %s27_s24 }
  0x15   :  { %p836_p9 = scmp.lt.u32.totalorder %s832_s27, %s962_s1 }
  0x17   :  { %p838_p10 = pnand %p836_p9, %p833_p8 }
  0x19   :  { %841 = shalt.err (!%p838_p10)
}
  0x1a   :  { %s842_s4 = scalar_lea.vmem %s28_s24, 6528  ;;  %p847_p12 = scmp.lt.s32.totalorder %s28_s24, %s28_s24 }
  0x1b   :  { %p843_p11 = scmp.ne.s32.totalorder %s28_s24, %s842_s4  ;;  %p848_p13 = scmp.lt.s32.totalorder %s842_s4, %s842_s4 }
  0x1d   :  { %p849_p0 = por %p848_p13, %p847_p12 }
  0x1f   :  { %p850_p1 = pnand %p849_p0, %p843_p11 }
  0x21   :  { %853 = shalt.err (!%p850_p1)
}
  0x22   :  { %33 = dma.hbm_to_vmem [thread:$0]  %s962_s1, 6528, %s28_s24, [#allocation7], %s871_s19, %s871_s19, %s872_s20  }
  0x23   :  { %864 = dma.done.wait [#allocation4], 256  }
  0x24   :  { %865 = vsyncadd [#allocation4], 4294967040 }
  0x25   :  { %866 = dma.done.wait [#allocation7], 6528  }
  0x26   :  { %867 = vsyncadd [#allocation7], 4294960768  ;;  %v874_v0 = vmov 0.0|0.0   ;;  %vm875_vm0 = vmmov 0   ;;  %v876_v1 = vmov 0.0   ;;  %v40_v2 = vld [vmem:[#allocation6] sm:$0xff] }
  0x27   :  { %702 = vmatprep.subr.bf16.mxu0 %v874_v0  ;;  %726 = vmatprep.subr.bf16.mxu1 %v874_v0  ;;  %v41_v3 = vld [vmem:[#allocation6 + $0x8] sm:$0xff]  ;;  %v56_v4 = vld [vmem:[#allocation6 + $0x80] sm:$0xff]  ;;  %v42_v7 = vld [vmem:[#allocation6 + $0x10] sm:$0xff]  ;;  %vm430_vm6 = vcmask 130048   ;;  %vm467_vm9 = vcmask 7168   ;;  %s854_s11 = scalar_lea.hbm %s963_s2, 16 }
  0x28   :  { %622 = vmatprep.mubr.msk.f32.mxu0 %vm875_vm0, %v876_v1  ;;  %657 = vmatprep.mubr.msk.f32.mxu1 %vm875_vm0, %v876_v1  ;;  %v703_v5 = vpack.c.bf16 %v41_v3, %v40_v2  ;;  %v57_v6 = vld [vmem:[#allocation6 + $0x88] sm:$0xff]  ;;  %v43_v8 = vld [vmem:[#allocation6 + $0x18] sm:$0xff]  ;;  %v58_v10 = vld [vmem:[#allocation6 + $0x90] sm:$0xff]  ;;  %p855_p2 = scmp.ne.s32.totalorder %s963_s2, %s854_s11  ;;  %p858_p3 = scmp.lt.u32.totalorder %s854_s11, %s963_s2 }
  0x29   :  { %v727_v9 = vpack.c.bf16 %v57_v6, %v56_v4  ;;  %v59_v11 = vld [vmem:[#allocation6 + $0x98] sm:$0xff]  ;;  %v706_v12 = vpack.c.bf16 %v43_v8, %v42_v7  ;;  %v44_v14 = vld [vmem:[#allocation6 + $0x20] sm:$0xff]  ;;  %v45_v15 = vld [vmem:[#allocation6 + $0x28] sm:$0xff] }
  0x2a   :  { %704 = vmatpush3.bf16.msra.mxu0 %v703_v5  ;;  %v730_v13 = vpack.c.bf16 %v59_v11, %v58_v10  ;;  %v60_v16 = vld [vmem:[#allocation6 + $0xa0] sm:$0xff]  ;;  %v61_v17 = vld [vmem:[#allocation6 + $0xa8] sm:$0xff]  ;;  %v709_v18 = vpack.c.bf16 %v45_v15, %v44_v14  ;;  %v46_v20 = vld [vmem:[#allocation6 + $0x30] sm:$0xff]  ;;  %p860_p4 = pnand %p858_p3, %p855_p2 }
  0x2b   :  { %728 = vmatpush3.bf16.msra.mxu1 %v727_v9  ;;  %705 = vmatprep.subr.bf16.mxu0 %v874_v0  ;;  %v733_v19 = vpack.c.bf16 %v61_v17, %v60_v16  ;;  %v47_v21 = vld [vmem:[#allocation6 + $0x38] sm:$0xff]  ;;  %v62_v22 = vld [vmem:[#allocation6 + $0xb0] sm:$0xff]  ;;  %v48_v26 = vld [vmem:[#allocation6 + $0x40] sm:$0xff] }
  0x2c   :  { %729 = vmatprep.subr.bf16.mxu1 %v874_v0  ;;  %v63_v23 = vld [vmem:[#allocation6 + $0xb8] sm:$0xff]  ;;  %v712_v24 = vpack.c.bf16 %v47_v21, %v46_v20  ;;  %v49_v27 = vld [vmem:[#allocation6 + $0x48] sm:$0xff]  ;;  %v64_v28 = vld [vmem:[#allocation6 + $0xc0] sm:$0xff] }
  0x2d   :  { %v736_v25 = vpack.c.bf16 %v63_v23, %v62_v22  ;;  %v65_v29 = vld [vmem:[#allocation6 + $0xc8] sm:$0xff]  ;;  %v715_v30 = vpack.c.bf16 %v49_v27, %v48_v26  ;;  %v50_v32 = vld [vmem:[#allocation6 + $0x50] sm:$0xff]  ;;  %v51_v33 = vld [vmem:[#allocation6 + $0x58] sm:$0xff] }
  0x2e   :  { %707 = vmatpush3.bf16.msra.mxu0 %v706_v12  ;;  %v739_v31 = vpack.c.bf16 %v65_v29, %v64_v28  ;;  %v66_v34 = vld [vmem:[#allocation6 + $0xd0] sm:$0xff]  ;;  %v67_v35 = vld [vmem:[#allocation6 + $0xd8] sm:$0xff]  ;;  %v718_v36 = vpack.c.bf16 %v51_v33, %v50_v32  ;;  %v52_v38 = vld [vmem:[#allocation6 + $0x60] sm:$0xff] }
  0x2f   :  { %731 = vmatpush3.bf16.msra.mxu1 %v730_v13  ;;  %708 = vmatprep.subr.bf16.mxu0 %v874_v0  ;;  %v742_v37 = vpack.c.bf16 %v67_v35, %v66_v34  ;;  %v53_v39 = vld [vmem:[#allocation6 + $0x68] sm:$0xff]  ;;  %v68_v40 = vld [vmem:[#allocation6 + $0xe0] sm:$0xff]  ;;  %v54_v44 = vld [vmem:[#allocation6 + $0x70] sm:$0xff] }
  0x30   :  { %732 = vmatprep.subr.bf16.mxu1 %v874_v0  ;;  %v69_v41 = vld [vmem:[#allocation6 + $0xe8] sm:$0xff]  ;;  %v721_v42 = vpack.c.bf16 %v53_v39, %v52_v38  ;;  %v55_v45 = vld [vmem:[#allocation6 + $0x78] sm:$0xff]  ;;  %v70_v46 = vld [vmem:[#allocation6 + $0xf0] sm:$0xff]  ;;  %v415_v39 = vlaneseq }
  0x31   :  { %v745_v43 = vpack.c.bf16 %v69_v41, %v68_v40  ;;  %v71_v47 = vld [vmem:[#allocation6 + $0xf8] sm:$0xff]  ;;  %v72_v48 = vld [vmem:[#allocation6 + $0x100] sm:$0xff]  ;;  %v73_v49 = vld [vmem:[#allocation6 + $0x108] sm:$0xff]  ;;  %v724_v50 = vpack.c.bf16 %v55_v45, %v54_v44 }
  0x32   :  { %710 = vmatpush3.bf16.msra.mxu0 %v709_v18  ;;  %v748_v51 = vpack.c.bf16 %v71_v47, %v70_v46  ;;  %v750_v52 = vpack.c.bf16 %v73_v49, %v72_v48  ;;  %v74_v53 = vld [vmem:[#allocation6 + $0x110] sm:$0xff]  ;;  %v75_v54 = vld [vmem:[#allocation6 + $0x118] sm:$0xff]  ;;  %v76_v58 = vld [vmem:[#allocation6 + $0x120] sm:$0xff]  ;;  %v416_v40 = vshrl.u32 %v415_v39, 7 }
  0x33   :  { %734 = vmatpush3.bf16.msra.mxu1 %v733_v19  ;;  %711 = vmatprep.subr.bf16.mxu0 %v874_v0  ;;  %v91_v55 = vld [vmem:[#allocation3] sm:$0xff]  ;;  %v168_v56 = vld [vmem:[#allocation3 + $0x8] sm:$0xff]  ;;  %v754_v57 = vpack.c.bf16 %v75_v54, %v74_v53  ;;  %v77_v59 = vld [vmem:[#allocation6 + $0x128] sm:$0xff] }
  0x34   :  { %735 = vmatprep.subr.bf16.mxu1 %v874_v0  ;;  %v758_v60 = vpack.c.bf16 %v77_v59, %v76_v58  ;;  %v78_v61 = vld [vmem:[#allocation6 + $0x130] sm:$0xff]  ;;  %v79_v62 = vld [vmem:[#allocation6 + $0x138] sm:$0xff]  ;;  %v81_v2 = vld [vmem:[#allocation6 + $0x148] sm:$0xff]  ;;  %v417_v41 = vadd.s32 8, %v416_v40 }
  0x35   :  { %v762_v63 = vpack.c.bf16 %v79_v62, %v78_v61  ;;  %v82_v4 = vld [vmem:[#allocation6 + $0x150] sm:$0xff]  ;;  %v83_v5 = vld [vmem:[#allocation6 + $0x158] sm:$0xff]  ;;  %v84_v7 = vld [vmem:[#allocation6 + $0x160] sm:$0xff] }
  0x36   :  { %713 = vmatpush3.bf16.msra.mxu0 %v712_v24  ;;  %v770_v6 = vpack.c.bf16 %v83_v5, %v82_v4  ;;  %v85_v8 = vld [vmem:[#allocation6 + $0x168] sm:$0xff]  ;;  %v86_v10 = vld [vmem:[#allocation6 + $0x170] sm:$0xff]  ;;  %v87_v11 = vld [vmem:[#allocation6 + $0x178] sm:$0xff] }
  0x37   :  { %737 = vmatpush3.bf16.msra.mxu1 %v736_v25  ;;  %714 = vmatprep.subr.bf16.mxu0 %v874_v0  ;;  %v774_v9 = vpack.c.bf16 %v85_v8, %v84_v7  ;;  %v778_v12 = vpack.c.bf16 %v87_v11, %v86_v10  ;;  %v530_v13 = vld [vmem:[#allocation6 + $0x180] ss:$0 sm:$0xff]  ;;  %v531_v14 = vld [vmem:[#allocation6 + $0x188] ss:$0 sm:$0xff]  ;;  %v532_v23 = vld [vmem:[#allocation6 + $0x190] ss:$0 sm:$0xff] }
  0x38   :  { %738 = vmatprep.subr.bf16.mxu1 %v874_v0 }
  0x3a   :  { %716 = vmatpush3.bf16.msra.mxu0 %v715_v30 }
  0x3b   :  { %740 = vmatpush3.bf16.msra.mxu1 %v739_v31  ;;  %717 = vmatprep.subr.bf16.mxu0 %v874_v0 }
  0x3c   :  { %741 = vmatprep.subr.bf16.mxu1 %v874_v0 }
  0x3e   :  { %719 = vmatpush3.bf16.msra.mxu0 %v718_v36 }
  0x3f   :  { %743 = vmatpush3.bf16.msra.mxu1 %v742_v37  ;;  %720 = vmatprep.subr.bf16.mxu0 %v874_v0 }
  0x40   :  { %744 = vmatprep.subr.bf16.mxu1 %v874_v0 }
  0x42   :  { %722 = vmatpush3.bf16.msra.mxu0 %v721_v42  ;;  %v419_v42 = vand.u32 127, %v415_v39 }
  0x43   :  { %746 = vmatpush3.bf16.msra.mxu1 %v745_v43  ;;  %723 = vmatprep.subr.bf16.mxu0 %v874_v0  ;;  %v420_v43 = vadd.s32 8, %v417_v41 }
  0x44   :  { %747 = vmatprep.subr.bf16.mxu1 %v874_v0  ;;  %v80_v0 = vld [vmem:[#allocation6 + $0x140] sm:$0xff]  ;;  %vm425_vm2 = vcmp.eq.s32.totalorder %v419_v42, %v416_v40  ;;  %vm421_vm4 = vcmp.eq.s32.totalorder %v419_v42, %v417_v41  ;;  %vm437_vm5 = vcmp.eq.s32.totalorder %v416_v40, %v419_v42  ;;  %vm483_vm7 = vcmp.ge.s32.totalorder %v419_v42, 8 }
  0x45   :  { %v766_v3 = vpack.c.bf16 %v81_v2, %v80_v0  ;;  %vm422_vm1 = vcmp.eq.s32.totalorder %v419_v42, %v420_v43  ;;  %vm438_vm8 = vcmp.eq.s32.totalorder %v417_v41, %v419_v42 }
  0x46   :  { %725 = vmatpush3.bf16.msra.mxu0 %v724_v50  ;;  %vm935_vm3 = vmor %vm422_vm1, %vm425_vm2 }
  0x47   :  { %749 = vmatpush3.bf16.msra.mxu1 %v748_v51  ;;  %751 = vmatprep.subr.bf16.mxu0 %v750_v52 }
  0x49   :  { %623 = vmatmul.mubr.f32.vlgmr.msra.gmra.mrb[0].mxu0 %v91_v55 }
  0x4a   :  { %658 = vmatmul.mubr.f32.vlgmr.msra.gmra.mrb[0].mxu1 %v168_v56  ;;  %753 = vmatpush3.bf16.msra.mxu0 %v750_v52 }
  0x4b   :  { %755 = vmatprep.subr.bf16.mxu0 %v754_v57 }
  0x4e   :  { %757 = vmatpush3.bf16.msra.mxu0 %v754_v57 }
  0x4f   :  { %759 = vmatprep.subr.bf16.mxu0 %v758_v60 }
  0x52   :  { %761 = vmatpush3.bf16.msra.mxu0 %v758_v60 }
  0x53   :  { %763 = vmatprep.subr.bf16.mxu0 %v762_v63 }
  0x56   :  { %765 = vmatpush3.bf16.msra.mxu0 %v762_v63 }
  0x57   :  { %767 = vmatprep.subr.bf16.mxu0 %v766_v3 }
  0x5a   :  { %769 = vmatpush3.bf16.msra.mxu0 %v766_v3 }
  0x5b   :  { %771 = vmatprep.subr.bf16.mxu0 %v770_v6 }
  0x5e   :  { %773 = vmatpush3.bf16.msra.mxu0 %v770_v6 }
  0x5f   :  { %775 = vmatprep.subr.bf16.mxu0 %v774_v9 }
  0x62   :  { %777 = vmatpush3.bf16.msra.mxu0 %v774_v9 }
  0x63   :  { %779 = vmatprep.subr.bf16.mxu0 %v778_v12 }
  0x66   :  { %781 = vmatpush3.bf16.msra.mxu0 %v778_v12 }
 0x11c   :  { %v162_v15 = vpop.f32.mrb[0].mxu0 }
 0x11d   :  { %v163_v16 = vadd.f32 %v530_v13, %v162_v15  ;;  %v239_v17 = vpop.f32.mrb[0].mxu1  ;;  %v624_v18 = vpop.f32.mrb[1].mxu0 }
 0x11e   :  { %v240_v19 = vadd.f32 %v531_v14, %v239_v17  ;;  %v659_v20 = vpop.f32.mrb[1].mxu1 }
 0x11f   :  { %v166_v21 = vmax.f32 %v163_v16, 0.0 }
 0x120   :  { %v243_v22 = vmax.f32 %v240_v19, 0.0 }
 0x121   :  { %692 = vmatprep.mubr.f32.mxu0 %v166_v21 }
 0x122   :  { %693 = vmatmul.mubr.f32.vlgmr.msra.gmra.mrb[2].mxu0 %v243_v22 }
 0x1f5   :  { %v694_v24 = vpop.f32.mrb[2].mxu0 }
 0x1f6   :  { %v317_v25 = vpop.f32.mrb[3].mxu0  ;;  %v323_v27 = vadd.f32 %v694_v24, %v532_v23 }
 0x1f7   :  { %v318_v26 = vadd.f32 %v532_v23, %v317_v25 }
 0x1f8   :  { %v327_v29 = vmul.f32 %v323_v27, %v323_v27 }
 0x1f9   :  { %v326_v28 = vmul.f32 %v318_v26, %v318_v26 }
 0x1fb   :  { %328 = vadd.xlane.f32.xlu0 %v326_v28 }
 0x1ff   :  { %330 = vadd.xlane.f32.xlu0 %v327_v29 }
 0x288   :  { %v329_v30 = vpop.xlane.xlu0 %328 }
 0x289   :  { %v332_v31 = vadd.f32 1e-24, %v329_v30 }
 0x28b   :  { %798 = vrsqrt.f32 %v332_v31 }
 0x28c   :  { %v331_v32 = vpop.xlane.xlu0 %330 }
 0x28d   :  { %v333_v33 = vadd.f32 1e-24, %v331_v32 }
 0x28f   :  { %800 = vrsqrt.f32 %v333_v33 }
 0x295   :  { %v799_v34 = vpop.eup %798 }
 0x296   :  { %v336_v35 = vmul.f32 %v799_v34, %v318_v26 }
 0x298   :  { %699 = vmatprep.mubr.f32.mxu1 %v336_v35 }
 0x299   :  { %v801_v36 = vpop.eup %800 }
 0x29a   :  { %v337_v37 = vmul.f32 %v801_v36, %v323_v27 }
 0x29c   :  { %v782_v38 = vpack.c.bf16 %v337_v37, %v336_v35 }
 0x29e   :  { %783 = vmatprep.subr.bf16.mxu1 %v782_v38 }
 0x29f   :  { %785 = vmatpush3.bf16.xpose.msra.mxu1 %v782_v38 }
 0x2a6   :  { %700 = vmatmul.mubr.f32.vlgmr.msra.gmra.mrb[2].mxu1 %v337_v37 }
 0x379   :  { %v701_v45 = vpop.f32.mrb[2].mxu1 }
 0x37a   :  { %v414_v46 = vmul.f32 10.0, %v701_v45  ;;  %v404_v47 = vpop.f32.mrb[3].mxu1 }
 0x37b   :  { %v413_v48 = vmul.f32 10.0, %v404_v47 }
 0x37c   :  { %v429_v49 = vsel %vm935_vm3, %v414_v46, 0.0  ;;  %v440_v54 = vsel %vm438_vm8, -1e+30, %v414_v46 }
 0x37d   :  { %v439_v50 = vsel %vm437_vm5, -1e+30, %v413_v48  ;;  %v428_v51 = vsel %vm421_vm4, %v413_v48, 0.0  ;;  %v484_v53 = vsel %vm483_vm7, %v413_v48, -1e+30  ;;  %v444_v55 = vsel %vm430_vm6, %v440_v54, -inf }
 0x37e   :  { %v441_v52 = vsel %vm430_vm6, %v439_v50, -inf  ;;  %v431_v3 = vsel %vm430_vm6, %v428_v51, 0.0  ;;  %v434_v4 = vsel %vm430_vm6, %v429_v49, 0.0  ;;  %v486_v5 = vsel %vm430_vm6, %v484_v53, -inf }
 0x37f   :  { %442 = vmax.xlane.f32.xlu1 %v441_v52 }
 0x383   :  { %445 = vmax.xlane.f32.xlu1 %v444_v55 }
 0x40c   :  { %v443_v56 = vpop.xlane.xlu1 %442 }
 0x40d   :  { %v447_v57 = vsub.f32 %v439_v50, %v443_v56 }
 0x40f   :  { %v449_v58 = vmul.f32 1.442695, %v447_v57 }
 0x410   :  { %v446_v59 = vpop.xlane.xlu1 %445 }
 0x411   :  { %802 = vpow2.f32 %v449_v58  ;;  %v448_v60 = vsub.f32 %v440_v54, %v446_v59 }
 0x413   :  { %v451_v61 = vmul.f32 1.442695, %v448_v60 }
 0x415   :  { %804 = vpow2.f32 %v451_v61 }
 0x41b   :  { %v803_v62 = vpop.eup %802 }
 0x41c   :  { %v453_v63 = vsel %vm430_vm6, %v803_v62, 0.0 }
 0x41d   :  { %454 = vadd.xlane.f32.xlu0 %v453_v63 }
 0x41f   :  { %v805_v0 = vpop.eup %804 }
 0x420   :  { %v456_v2 = vsel %vm430_vm6, %v805_v0, 0.0 }
 0x421   :  { %457 = vadd.xlane.f32.xlu1 %v456_v2  ;;  %432 = vadd.xlane.f32.xlu0 %v431_v3 }
 0x425   :  { %435 = vadd.xlane.f32.xlu1 %v434_v4  ;;  %487 = vmax.xlane.f32.xlu0 %v486_v5 }
 0x4aa   :  { %v455_v6 = vpop.xlane.xlu0 %454 }
 0x4ab   :  { %806 = vlog2.f32 %v455_v6 }
 0x4ae   :  { %v458_v7 = vpop.xlane.xlu1 %457  ;;  %v433_v8 = vpop.xlane.xlu0 %432 }
 0x4af   :  { %808 = vlog2.f32 %v458_v7 }
 0x4b2   :  { %v488_v9 = vpop.xlane.xlu0 %487  ;;  %v436_v19 = vpop.xlane.xlu1 %435 }
 0x4b3   :  { %vm494_vm10 = vcmp.ge.f32.partialorder %v433_v8, %v488_v9 }
 0x4b4   :  { %v498_v10 = vsel %vm494_vm10, 1.0, %v876_v1 }
 0x4b5   :  { %v807_v11 = vpop.eup %806  ;;  %v500_v12 = vsel %vm467_vm9, %v498_v10, 0.0 }
 0x4b6   :  { %v460_v13 = vmul.f32 0.6931472, %v807_v11  ;;  %503 = vadd.xlane.f32.xlu0 %v500_v12 }
 0x4b8   :  { %v463_v14 = vadd.f32 %v460_v13, %v443_v56 }
 0x4b9   :  { %v809_v15 = vpop.eup %808 }
 0x4ba   :  { %v462_v16 = vmul.f32 0.6931472, %v809_v15  ;;  %v465_v17 = vsub.f32 %v463_v14, %v433_v8 }
 0x4bc   :  { %v464_v18 = vadd.f32 %v462_v16, %v446_v59  ;;  %v468_v21 = vsel %vm467_vm9, %v465_v17, 0.0 }
 0x4be   :  { %v466_v20 = vsub.f32 %v464_v18, %v436_v19 }
 0x4c0   :  { %v469_v22 = vsel %vm467_vm9, %v466_v20, 0.0 }
 0x4c1   :  { %v470_v23 = vadd.f32 %v469_v22, %v468_v21 }
 0x4c3   :  { %471 = vadd.xlane.f32.xlu1 %v470_v23 }
 0x543   :  { %v504_v24 = vpop.xlane.xlu0 %503 }
 0x544   :  { %v505_v25 = vrot.slane %v504_v24, 4 }
 0x546   :  { %v506_v26 = vadd.f32 %v505_v25, %v504_v24 }
 0x548   :  { %v507_v27 = vrot.slane %v506_v26, 2 }
 0x54a   :  { %v508_v30 = vadd.f32 %v507_v27, %v506_v26 }
 0x54c   :  { %v509_v33 = vrot.slane %v508_v30, 1 }
 0x54e   :  { %v510_v36 = vadd.f32 %v509_v33, %v508_v30 }
 0x550   :  { %v472_v1 = vpop.xlane.xlu1 %471 }
 0x551   :  { %v473_v28 = vrot.slane %v472_v1, 4 }
 0x553   :  { %v474_v29 = vadd.f32 %v473_v28, %v472_v1 }
 0x555   :  { %v475_v31 = vrot.slane %v474_v29, 2 }
 0x557   :  { %v476_v32 = vadd.f32 %v475_v31, %v474_v29 }
 0x559   :  { %v477_v34 = vrot.slane %v476_v32, 1 }
 0x55b   :  { %v478_v35 = vadd.f32 %v477_v34, %v476_v32 }
 0x55d   :  { %786 = vpush %v478_v35 }
 0x55e   :  { %788 = vpush %v510_v36 }
 0x58e   :  { %s787_s1 = spop %786 }
 0x58f   :  { %s480_s6 = smul.f32 0.0625, %s787_s1  ;;  %s789_s7 = spop %788 }
 0x590   :  { %s512_s8 = smul.f32 0.125, %s789_s7 }
 0x591   :  { %482 = sst [smem:[#allocation8]] %s480_s6 }
 0x592   :  { %514 = sst [smem:[#allocation8 + $0x1]] %s512_s8 }
 0x593   :  { %863 = shalt.err (!%p860_p4)
}
 0x594   :  { %s877_s16 = smov [#allocation8]  }
 0x595   :  { %522 = dma.smem_to_hbm %s877_s16, 16, %s963_s2, [#allocation5]  }
 0x596   :  { %868 = dma.done.wait [#allocation5], 16  }
 0x597   :  { %869 = vsyncadd [#allocation5], 4294967280 }
 0x598   :  { %526 = sfence }
 0x599   :  { %527 = vsyncpa [#allocation4], 1 }
 0x59a   :  { %528 = vsyncpa [#allocation7], 1 }
 0x59b   :  { %529 = vsyncpa [#allocation5], 1 }

</bundles_post_ra>
